<compile_context>
chip_gen: v7x
topology: tpu7x:2x2x1
jax: 0.10.0
libtpu: 0.0.40
codegen_flags: <defaults>
</compile_context>

<pallas_src>
import functools
import math

import jax
import jax.numpy as jnp
from jax.experimental import pallas as pl
from jax.experimental.pallas import tpu as pltpu


def _round_up(x: int, m: int) -> int:
    return (x + m - 1) // m * m


# ----------------------------- Pallas kernel ------------------------------- #

def _fused_kernel(x_ref, w1_ref, b1_ref, w2_ref, b2_ref, raw_ref,
                  mean_ref, unc_ref, *, shift, min_var):
    """Fused (Linear -> ReLU -> Linear) + DiagGaussActivation.

    Matmuls use bf16 MXU inputs with f32 accumulation; all elementwise math stays f32.
    The uncertainty output block is grid-invariant; the (tiny) idempotent write per
    grid step is free under the MXU-bound phase and megacore-safe.
    """
    # --- mean MLP ---
    x_bf = x_ref[...].astype(jnp.bfloat16)
    w1_bf = w1_ref[...].astype(jnp.bfloat16)
    h = jnp.dot(x_bf, w1_bf, preferred_element_type=jnp.float32) + b1_ref[...]
    h = jnp.maximum(h, 0.0)

    w2_bf = w2_ref[...].astype(jnp.bfloat16)
    mean = jnp.dot(h.astype(jnp.bfloat16), w2_bf,
                   preferred_element_type=jnp.float32) + b2_ref[...]
    mean_ref[...] = mean.astype(mean_ref.dtype)

    # --- uncertainty: softplus(raw + shift) + min_var (f32, numerically stable) ---
    r = raw_ref[...].astype(jnp.float32) + shift
    sp = jnp.maximum(r, 0.0) + jnp.log1p(jnp.exp(-jnp.abs(r)))
    unc_ref[...] = (sp + min_var).astype(unc_ref.dtype)


# ------------------------------ JAX wrapper -------------------------------- #

def elementwise_uncertainty_net(x, params, *, init_var, min_var, block_b=512):
    """Pallas equivalent of ElementWiseUncertaintyNet.forward (mean_net = 2-layer MLP)."""
    assert init_var > min_var, "init_var must be > min_var (inverse-softplus domain)"
    shift = float(math.log(math.expm1(init_var - min_var)))

    w1, b1 = params["w1"], params["b1"]
    w2, b2 = params["w2"], params["b2"]
    raw = params["raw_uncertainty"]

    B, F = x.shape
    H = w1.shape[1]
    D = w2.shape[1]

    # Lane-dense padding (multiples of 128 on lane dims); zero padding is exact:
    # padded x cols / w rows contribute 0 to the dots, padded hidden cols are relu(0)=0,
    # padded output cols are sliced away below.
    F_p = _round_up(F, 128)
    H_p = _round_up(H, 128)
    D_p = _round_up(D, 128)
    TB = min(_round_up(B, 8), block_b)   # batch tile (sublane multiple of 8)
    B_p = _round_up(B, TB)

    x_p = jnp.pad(x, ((0, B_p - B), (0, F_p - F)))
    w1_p = jnp.pad(w1, ((0, F_p - F), (0, H_p - H)))
    b1_p = jnp.pad(b1, ((0, 0), (0, H_p - H)))
    w2_p = jnp.pad(w2, ((0, H_p - H), (0, D_p - D)))
    b2_p = jnp.pad(b2, ((0, 0), (0, D_p - D)))
    raw_p = jnp.pad(raw, ((0, 0), (0, D_p - D)))

    kernel = functools.partial(_fused_kernel, shift=shift, min_var=float(min_var))

    mean_p, unc_p = pl.pallas_call(
        kernel,
        out_shape=(
            jax.ShapeDtypeStruct((B_p, D_p), x.dtype),
            jax.ShapeDtypeStruct((1, D_p), raw.dtype),
        ),
        grid=(B_p // TB,),
        in_specs=[
            pl.BlockSpec((TB, F_p), lambda i: (i, 0)),   # activations: tiled over batch
            pl.BlockSpec((F_p, H_p), lambda i: (0, 0)),  # weights/biases: resident
            pl.BlockSpec((1, H_p), lambda i: (0, 0)),
            pl.BlockSpec((H_p, D_p), lambda i: (0, 0)),
            pl.BlockSpec((1, D_p), lambda i: (0, 0)),
            pl.BlockSpec((1, D_p), lambda i: (0, 0)),    # raw_uncertainty: resident
        ],
        out_specs=(
            pl.BlockSpec((TB, D_p), lambda i: (i, 0)),
            pl.BlockSpec((1, D_p), lambda i: (0, 0)),
        ),
        compiler_params=pltpu.CompilerParams(
            dimension_semantics=("parallel",)),           # megacore over batch tiles
    )(x_p, w1_p, b1_p, w2_p, b2_p, raw_p)

    # Slice padding off.
    return mean_p[:B, :D], unc_p[:, :D]


# ---------------------------------- main ----------------------------------- #

if __name__ == "__main__":
    B, F, H, D = 8, 32, 32, 16          # batch, in_features, hidden, dim
    init_var, min_var = 1.0, 1e-3

    key = jax.random.PRNGKey(0)
    k1, k2, k3 = jax.random.split(key, 3)

    params = {
        "w1": jax.random.normal(k1, (F, H), jnp.float32) * (1.0 / math.sqrt(F)),
        "b1": jnp.zeros((1, H), jnp.float32),
        "w2": jax.random.normal(k2, (H, D), jnp.float32) * (1.0 / math.sqrt(H)),
        "b2": jnp.zeros((1, D), jnp.float32),
        # PyTorch init: nn.Parameter(torch.zeros(1, dim))
        "raw_uncertainty": jnp.zeros((1, D), jnp.float32),
    }

    x = jax.random.normal(k3, (B, F), jnp.float32)

    fwd = jax.jit(functools.partial(
        elementwise_uncertainty_net, init_var=init_var, min_var=min_var))
    mean, unc = fwd(x, params)
    mean = jax.block_until_ready(mean)
    unc = jax.block_until_ready(unc)

    # --- references ---
    # (a) numerics-matched reference (same bf16 rounding of matmul operands).
    bf = lambda a: a.astype(jnp.bfloat16)
    h_m = jnp.maximum(
        jnp.dot(bf(x), bf(params["w1"]), preferred_element_type=jnp.float32)
        + params["b1"], 0.0)
    mean_bf_ref = (jnp.dot(bf(h_m), bf(params["w2"]),
                           preferred_element_type=jnp.float32) + params["b2"])
    # (b) pure-f32 reference (loose tolerance: kernel uses bf16 MXU inputs).
    h32 = jnp.maximum(x @ params["w1"] + params["b1"], 0.0)
    mean_f32_ref = h32 @ params["w2"] + params["b2"]

    shift = math.log(math.expm1(init_var - min_var))
    unc_ref = jax.nn.softplus(params["raw_uncertainty"] + shift) + min_var

    assert mean.shape == (B, D) and unc.shape == (1, D)
    assert jnp.allclose(mean, mean_bf_ref, atol=1e-3, rtol=1e-3), "bf16-matched mean mismatch"
    assert jnp.allclose(mean, mean_f32_ref, atol=3e-2, rtol=3e-2), "f32 mean mismatch"
    assert jnp.allclose(unc, unc_ref, atol=1e-5, rtol=1e-5), "uncertainty mismatch"

    print("KERNEL_OK")
</pallas_src>

<mosaic_0001>
module attributes {stable_mosaic.version = 11 : i64} {
  func.func @_fused_kernel(%arg0: i32, %arg1: memref<8x128xf32, #tpu.memory_space<vmem>>, %arg2: memref<128x128xf32, #tpu.memory_space<vmem>>, %arg3: memref<1x128xf32, #tpu.memory_space<vmem>>, %arg4: memref<128x128xf32, #tpu.memory_space<vmem>>, %arg5: memref<1x128xf32, #tpu.memory_space<vmem>>, %arg6: memref<1x128xf32, #tpu.memory_space<vmem>>, %arg7: memref<8x128xf32, #tpu.memory_space<vmem>>, %arg8: memref<1x128xf32, #tpu.memory_space<vmem>>) attributes {dimension_semantics = [#tpu.dimension_semantics<parallel>], iteration_bounds = array<i64: 1>, scalar_prefetch = 0 : i64, scratch_operands = 0 : i64, tpu.core_type = #tpu.core_type<tc>, window_params = [{transform_indices = @transform_0, window_bounds = array<i64: 8, 128>}, {pipeline_mode = #tpu.pipeline_mode<synchronous>, transform_indices = @transform_1, window_bounds = array<i64: 128, 128>}, {pipeline_mode = #tpu.pipeline_mode<synchronous>, transform_indices = @transform_2, window_bounds = array<i64: 1, 128>}, {pipeline_mode = #tpu.pipeline_mode<synchronous>, transform_indices = @transform_3, window_bounds = array<i64: 128, 128>}, {pipeline_mode = #tpu.pipeline_mode<synchronous>, transform_indices = @transform_4, window_bounds = array<i64: 1, 128>}, {pipeline_mode = #tpu.pipeline_mode<synchronous>, transform_indices = @transform_5, window_bounds = array<i64: 1, 128>}, {transform_indices = @transform_6, window_bounds = array<i64: 8, 128>}, {pipeline_mode = #tpu.pipeline_mode<synchronous>, transform_indices = @transform_7, window_bounds = array<i64: 1, 128>}]} {
    %c0 = arith.constant 0 : index
    %c0_0 = arith.constant 0 : index
    %0 = vector.load %arg1[%c0, %c0_0] : memref<8x128xf32, #tpu.memory_space<vmem>>, vector<8x128xf32>
    %1 = arith.truncf %0 : vector<8x128xf32> to vector<8x128xbf16>
    %c0_1 = arith.constant 0 : index
    %c0_2 = arith.constant 0 : index
    %2 = vector.load %arg2[%c0_1, %c0_2] : memref<128x128xf32, #tpu.memory_space<vmem>>, vector<128x128xf32>
    %3 = arith.truncf %2 : vector<128x128xf32> to vector<128x128xbf16>
    %cst = arith.constant dense<0.000000e+00> : vector<8x128xf32>
    %4 = tpu.matmul %1, %3, %cst {dimension_numbers = #tpu.dot_dimension_numbers<[1], [0], [0], [1], [0, 0, 1, 1], [], []>} : vector<8x128xbf16>, vector<128x128xbf16>, vector<8x128xf32> -> vector<8x128xf32>
    %c0_3 = arith.constant 0 : index
    %c0_4 = arith.constant 0 : index
    %5 = vector.load %arg3[%c0_3, %c0_4] : memref<1x128xf32, #tpu.memory_space<vmem>>, vector<1x128xf32>
    %6 = vector.broadcast %5 : vector<1x128xf32> to vector<8x128xf32>
    %7 = arith.addf %4, %6 : vector<8x128xf32>
    %cst_5 = arith.constant 0.000000e+00 : f32
    %8 = vector.broadcast %cst_5 : f32 to vector<8x128xf32>
    %9 = arith.maximumf %7, %8 : vector<8x128xf32>
    %c0_6 = arith.constant 0 : index
    %c0_7 = arith.constant 0 : index
    %10 = vector.load %arg4[%c0_6, %c0_7] : memref<128x128xf32, #tpu.memory_space<vmem>>, vector<128x128xf32>
    %11 = arith.truncf %10 : vector<128x128xf32> to vector<128x128xbf16>
    %12 = arith.truncf %9 : vector<8x128xf32> to vector<8x128xbf16>
    %cst_8 = arith.constant dense<0.000000e+00> : vector<8x128xf32>
    %13 = tpu.matmul %12, %11, %cst_8 {dimension_numbers = #tpu.dot_dimension_numbers<[1], [0], [0], [1], [0, 0, 1, 1], [], []>} : vector<8x128xbf16>, vector<128x128xbf16>, vector<8x128xf32> -> vector<8x128xf32>
    %c0_9 = arith.constant 0 : index
    %c0_10 = arith.constant 0 : index
    %14 = vector.load %arg5[%c0_9, %c0_10] : memref<1x128xf32, #tpu.memory_space<vmem>>, vector<1x128xf32>
    %15 = vector.broadcast %14 : vector<1x128xf32> to vector<8x128xf32>
    %16 = arith.addf %13, %15 : vector<8x128xf32>
    %c0_11 = arith.constant 0 : index
    %c0_12 = arith.constant 0 : index
    %17 = vector.load %arg7[%c0_11, %c0_12] : memref<8x128xf32, #tpu.memory_space<vmem>>, vector<8x128xf32>
    tpu.vector_store %arg7[%c0_11, %c0_12], %16 {strides = array<i32>} : memref<8x128xf32, #tpu.memory_space<vmem>>, vector<8x128xf32>,
    %c0_13 = arith.constant 0 : index
    %c0_14 = arith.constant 0 : index
    %18 = vector.load %arg6[%c0_13, %c0_14] : memref<1x128xf32, #tpu.memory_space<vmem>>, vector<1x128xf32>
    %cst_15 = arith.constant 0.53974241 : f32
    %19 = vector.broadcast %cst_15 : f32 to vector<1x128xf32>
    %20 = arith.addf %18, %19 : vector<1x128xf32>
    %cst_16 = arith.constant 0.000000e+00 : f32
    %21 = vector.broadcast %cst_16 : f32 to vector<1x128xf32>
    %22 = arith.maximumf %20, %21 : vector<1x128xf32>
    %23 = math.absf %20 : vector<1x128xf32>
    %cst_17 = arith.constant 0.000000e+00 : f32
    %24 = vector.broadcast %cst_17 : f32 to vector<1x128xf32>
    %25 = arith.subf %24, %23 : vector<1x128xf32>
    %26 = math.exp %25 : vector<1x128xf32>
    %27 = math.log1p %26 : vector<1x128xf32>
    %28 = arith.addf %22, %27 : vector<1x128xf32>
    %cst_18 = arith.constant 1.000000e-03 : f32
    %29 = vector.broadcast %cst_18 : f32 to vector<1x128xf32>
    %30 = arith.addf %28, %29 : vector<1x128xf32>
    %c0_19 = arith.constant 0 : index
    %c0_20 = arith.constant 0 : index
    %31 = vector.load %arg8[%c0_19, %c0_20] : memref<1x128xf32, #tpu.memory_space<vmem>>, vector<1x128xf32>
    tpu.vector_store %arg8[%c0_19, %c0_20], %30 {strides = array<i32>} : memref<1x128xf32, #tpu.memory_space<vmem>>, vector<1x128xf32>,
    return
  }
  func.func @transform_0(%arg0: i32) -> (i32, i32) {
    %c0_i32 = arith.constant 0 : i32
    %c0_i32_0 = arith.constant 0 : i32
    return %arg0, %c0_i32 : i32, i32
  }
  func.func @transform_1(%arg0: i32) -> (i32, i32) {
    %c0_i32 = arith.constant 0 : i32
    %c0_i32_0 = arith.constant 0 : i32
    %c0_i32_1 = arith.constant 0 : i32
    return %c0_i32, %c0_i32_0 : i32, i32
  }
  func.func @transform_2(%arg0: i32) -> (i32, i32) {
    %c0_i32 = arith.constant 0 : i32
    %c0_i32_0 = arith.constant 0 : i32
    %c0_i32_1 = arith.constant 0 : i32
    return %c0_i32, %c0_i32_0 : i32, i32
  }
  func.func @transform_3(%arg0: i32) -> (i32, i32) {
    %c0_i32 = arith.constant 0 : i32
    %c0_i32_0 = arith.constant 0 : i32
    %c0_i32_1 = arith.constant 0 : i32
    return %c0_i32, %c0_i32_0 : i32, i32
  }
  func.func @transform_4(%arg0: i32) -> (i32, i32) {
    %c0_i32 = arith.constant 0 : i32
    %c0_i32_0 = arith.constant 0 : i32
    %c0_i32_1 = arith.constant 0 : i32
    return %c0_i32, %c0_i32_0 : i32, i32
  }
  func.func @transform_5(%arg0: i32) -> (i32, i32) {
    %c0_i32 = arith.constant 0 : i32
    %c0_i32_0 = arith.constant 0 : i32
    %c0_i32_1 = arith.constant 0 : i32
    return %c0_i32, %c0_i32_0 : i32, i32
  }
  func.func @transform_6(%arg0: i32) -> (i32, i32) {
    %c0_i32 = arith.constant 0 : i32
    %c0_i32_0 = arith.constant 0 : i32
    return %arg0, %c0_i32 : i32, i32
  }
  func.func @transform_7(%arg0: i32) -> (i32, i32) {
    %c0_i32 = arith.constant 0 : i32
    %c0_i32_0 = arith.constant 0 : i32
    %c0_i32_1 = arith.constant 0 : i32
    return %c0_i32, %c0_i32_0 : i32, i32
  }
}

</mosaic_0001>

<bundles_post_ra>
// kernel: elementwise_uncertainty_net.1
= control target key start
LH: loop header
LB: loop body
LE: loop exit
PB: predicated region body
PF: predicated region fallthrough
CT: control target
= control target key end

     0   :  { %13 = vsyncpa [#allocation3], 0  ;;  %v338_v3 = vmov 0.0   ;;  %vm339_vm0 = vmmov 0   ;;  %s532_s0 = inlined_call_operand.vmem [shape: f32[8,128], index: 0, kind: input, shape index: {}]   ;;  %s533_s1 = inlined_call_operand.vmem [shape: f32[128,128], index: 1, kind: input, shape index: {}]   ;;  %s534_s2 = inlined_call_operand.vmem [shape: f32[1,128], index: 2, kind: input, shape index: {}]   ;;  %s535_s3 = inlined_call_operand.vmem [shape: f32[128,128], index: 3, kind: input, shape index: {}]   ;;  %s536_s4 = inlined_call_operand.vmem [shape: f32[1,128], index: 4, kind: input, shape index: {}]   ;;  %s537_s5 = inlined_call_operand.vmem [shape: f32[1,128], index: 5, kind: input, shape index: {}]   ;;  %s538_s6 = inlined_call_operand.hbm [shape: f32[8,128], index: 6, kind: output, shape index: {0}]   ;;  %s539_s7 = inlined_call_operand.hbm [shape: f32[1,128], index: 7, kind: output, shape index: {1}]  }
   0x1   :  { %v30_v0 = vld [vmem:[%s533_s1] sm:$0xff]  ;;  %v31_v1 = vld [vmem:[%s533_s1 + $0x8] sm:$0xff]  ;;  %v32_v2 = vld [vmem:[%s533_s1 + $0x10] sm:$0xff]  ;;  %242 = vmatprep.subr.bf16.mxu0 %v338_v3  ;;  %258 = vmatprep.mubr.msk.bf16.mxu0 %vm339_vm0, %v338_v3 }
   0x2   :  { %v46_v4 = vpack.c.bf16 %v31_v1, %v30_v0  ;;  %v33_v5 = vld [vmem:[%s533_s1 + $0x18] sm:$0xff]  ;;  %262 = vmatprep.subr.bf16.mxu1 %v338_v3  ;;  %278 = vmatprep.mubr.msk.bf16.mxu1 %vm339_vm0, %v338_v3  ;;  %v34_v7 = vld [vmem:[%s533_s1 + $0x20] sm:$0xff]  ;;  %v35_v8 = vld [vmem:[%s533_s1 + $0x28] sm:$0xff] }
   0x3   :  { %v47_v6 = vpack.c.bf16 %v33_v5, %v32_v2  ;;  %v102_v9 = vld [vmem:[%s535_s3] sm:$0xff]  ;;  %v103_v10 = vld [vmem:[%s535_s3 + $0x8] sm:$0xff]  ;;  %v104_v11 = vld [vmem:[%s535_s3 + $0x10] sm:$0xff]  ;;  %v48_v13 = vpack.c.bf16 %v35_v8, %v34_v7 }
   0x4   :  { %243 = vmatpush3.bf16.msra.mxu0 %v46_v4  ;;  %v105_v12 = vld [vmem:[%s535_s3 + $0x18] sm:$0xff]  ;;  %v118_v14 = vpack.c.bf16 %v103_v10, %v102_v9  ;;  %v36_v15 = vld [vmem:[%s533_s1 + $0x30] sm:$0xff]  ;;  %v106_v18 = vld [vmem:[%s535_s3 + $0x20] sm:$0xff] }
   0x5   :  { %244 = vmatprep.subr.bf16.mxu0 %v338_v3  ;;  %v37_v16 = vld [vmem:[%s533_s1 + $0x38] sm:$0xff]  ;;  %v119_v17 = vpack.c.bf16 %v105_v12, %v104_v11  ;;  %v107_v19 = vld [vmem:[%s535_s3 + $0x28] sm:$0xff] }
   0x6   :  { %263 = vmatpush3.bf16.msra.mxu1 %v118_v14 }
   0x7   :  { %264 = vmatprep.subr.bf16.mxu1 %v338_v3 }
   0x8   :  { %245 = vmatpush3.bf16.msra.mxu0 %v47_v6 }
   0x9   :  { %246 = vmatprep.subr.bf16.mxu0 %v338_v3 }
   0xa   :  { %14 = vsyncpa [#allocation5], 0  ;;  %v49_v20 = vpack.c.bf16 %v37_v16, %v36_v15  ;;  %v38_v21 = vld [vmem:[%s533_s1 + $0x40] sm:$0xff]  ;;  %v39_v22 = vld [vmem:[%s533_s1 + $0x48] sm:$0xff]  ;;  %265 = vmatpush3.bf16.msra.mxu1 %v119_v17  ;;  %v120_v23 = vpack.c.bf16 %v107_v19, %v106_v18 }
   0xb   :  { %266 = vmatprep.subr.bf16.mxu1 %v338_v3  ;;  %v108_v24 = vld [vmem:[%s535_s3 + $0x30] sm:$0xff]  ;;  %v109_v25 = vld [vmem:[%s535_s3 + $0x38] sm:$0xff]  ;;  %v50_v26 = vpack.c.bf16 %v39_v22, %v38_v21  ;;  %v110_v30 = vld [vmem:[%s535_s3 + $0x40] sm:$0xff] }
   0xc   :  { %247 = vmatpush3.bf16.msra.mxu0 %v48_v13  ;;  %v40_v27 = vld [vmem:[%s533_s1 + $0x50] sm:$0xff]  ;;  %v41_v28 = vld [vmem:[%s533_s1 + $0x58] sm:$0xff]  ;;  %v121_v29 = vpack.c.bf16 %v109_v25, %v108_v24  ;;  %v111_v31 = vld [vmem:[%s535_s3 + $0x48] sm:$0xff] }
   0xd   :  { %248 = vmatprep.subr.bf16.mxu0 %v338_v3  ;;  %v51_v32 = vpack.c.bf16 %v41_v28, %v40_v27  ;;  %v42_v33 = vld [vmem:[%s533_s1 + $0x60] sm:$0xff]  ;;  %v43_v34 = vld [vmem:[%s533_s1 + $0x68] sm:$0xff]  ;;  %v122_v35 = vpack.c.bf16 %v111_v31, %v110_v30  ;;  %v112_v36 = vld [vmem:[%s535_s3 + $0x50] sm:$0xff] }
   0xe   :  { %267 = vmatpush3.bf16.msra.mxu1 %v120_v23  ;;  %v113_v37 = vld [vmem:[%s535_s3 + $0x58] sm:$0xff]  ;;  %v52_v38 = vpack.c.bf16 %v43_v34, %v42_v33  ;;  %v44_v39 = vld [vmem:[%s533_s1 + $0x70] sm:$0xff]  ;;  %v28_v43 = vld [vmem:[%s532_s0] sm:$0xff] }
   0xf   :  { %268 = vmatprep.subr.bf16.mxu1 %v338_v3  ;;  %v45_v40 = vld [vmem:[%s533_s1 + $0x78] sm:$0xff]  ;;  %v123_v41 = vpack.c.bf16 %v113_v37, %v112_v36  ;;  %v29_v44 = vpack.c.bf16 %v28_v43, %v28_v43  ;;  %v114_v45 = vld [vmem:[%s535_s3 + $0x60] sm:$0xff]  ;;  %v115_v46 = vld [vmem:[%s535_s3 + $0x68] sm:$0xff] }
  0x10   :  { %249 = vmatpush3.bf16.msra.mxu0 %v49_v20  ;;  %v53_v42 = vpack.c.bf16 %v45_v40, %v44_v39  ;;  %v124_v47 = vpack.c.bf16 %v115_v46, %v114_v45  ;;  %v116_v48 = vld [vmem:[%s535_s3 + $0x70] sm:$0xff]  ;;  %v117_v49 = vld [vmem:[%s535_s3 + $0x78] sm:$0xff]  ;;  %v222_v51 = vld [vmem:[%s534_s2] ss:$0 sm:$0xff]  ;;  %s340_s2 = smov [#allocation4]  }
  0x11   :  { %250 = vmatprep.subr.bf16.mxu0 %v338_v3  ;;  %v125_v50 = vpack.c.bf16 %v117_v49, %v116_v48  ;;  %v175_v59 = vld [vmem:[%s537_s5] sm:$0x1]  ;;  %s210_s3 = sshll.u32 %s340_s2, 4  ;;  %s211_s3 = int_to_ptr.vmem [resolvable:$true] %s210_s3 }
  0x12   :  { %269 = vmatpush3.bf16.msra.mxu1 %v121_v29  ;;  %v176_v60 = vadd.f32 0.5397424, %v175_v59  ;;  %s290_s5 = scalar_lea.vmem %s211_s3, 16  ;;  %s294_s23 = scalar_lea.vmem %s211_s3, 32 }
  0x13   :  { %270 = vmatprep.subr.bf16.mxu1 %v338_v3  ;;  %p291_p0 = scmp.ne.s32.totalorder %s211_s3, %s290_s5  ;;  %p295_p1 = scmp.lt.s32.totalorder %s211_s3, %s211_s3 }
  0x14   :  { %251 = vmatpush3.bf16.msra.mxu0 %v50_v26  ;;  %v178_v61 = vand.u32 2147483647, %v176_v60  ;;  %v177_v8 = vmax.f32 %v176_v60, 0.0  ;;  %p296_p2 = scmp.lt.s32.totalorder %s294_s23, %s290_s5 }
  0x15   :  { %252 = vmatprep.subr.bf16.mxu0 %v338_v3 }
  0x16   :  { %271 = vmatpush3.bf16.msra.mxu1 %v122_v35  ;;  %v179_v62 = vsub.f32 0.0, %v178_v61  ;;  %p297_p3 = por %p296_p2, %p295_p1 }
  0x17   :  { %272 = vmatprep.subr.bf16.mxu1 %v338_v3 }
  0x18   :  { %253 = vmatpush3.bf16.msra.mxu0 %v51_v32  ;;  %v180_v63 = vmul.f32 1.442695, %v179_v62  ;;  %p298_p4 = pnand %p297_p3, %p291_p0 }
  0x19   :  { %254 = vmatprep.subr.bf16.mxu0 %v338_v3 }
  0x1a   :  { %273 = vmatpush3.bf16.msra.mxu1 %v123_v41  ;;  %286 = vpow2.f32 %v180_v63 }
  0x1b   :  { %274 = vmatprep.subr.bf16.mxu1 %v338_v3 }
  0x1c   :  { %255 = vmatpush3.bf16.msra.mxu0 %v52_v38 }
  0x1d   :  { %256 = vmatprep.subr.bf16.mxu0 %v338_v3 }
  0x1e   :  { %275 = vmatpush3.bf16.msra.mxu1 %v124_v47 }
  0x1f   :  { %276 = vmatprep.subr.bf16.mxu1 %v338_v3 }
  0x20   :  { %257 = vmatpush3.bf16.msra.mxu0 %v53_v42 }
  0x22   :  { %277 = vmatpush3.bf16.msra.mxu1 %v125_v50 }
  0x23   :  { %259 = vmatmul.mubr.bf16.vlgmr.msra.gmra.mrb[0].mxu0 %v29_v44 }
  0x24   :  { %v287_v0 = vpop.eup %286 }
  0x25   :  { %v182_v1 = vadd.f32 1.0, %v287_v0  ;;  %v185_v2 = vmul.f32 -0.5, %v287_v0  ;;  %v188_v5 = vand.u32 2147483647, %v287_v0 }
  0x27   :  { %288 = vlog2.f32 %v182_v1  ;;  %v186_v3 = vadd.f32 1.0, %v185_v2  ;;  %vm189_vm1 = vcmp.lt.f32.partialorder %v188_v5, 0.0004427343 }
  0x29   :  { %v187_v7 = vmul.f32 %v287_v0, %v186_v3 }
  0x31   :  { %v289_v4 = vpop.eup %288 }
  0x32   :  { %v184_v6 = vmul.f32 0.6931472, %v289_v4 }
  0x34   :  { %v190_v9 = vsel %vm189_vm1, %v187_v7, %v184_v6 }
  0x35   :  { %v191_v10 = vadd.f32 %v190_v9, %v177_v8 }
  0x37   :  { %v192_v11 = vadd.f32 0.001, %v191_v10 }
  0x39   :  { %193 = vst [vmem:[#allocation4] sm:$0x1] %v192_v11 }
  0xf6   :  { %v95_v52 = vpop.f32.mrb[0].mxu0 }
  0xf7   :  { %v96_v53 = vadd.f32 %v222_v51, %v95_v52  ;;  %v260_v54 = vpop.f32.mrb[1].mxu0 }
  0xf8   :  { %v98_v55 = vpop.f32.mrb[2].mxu0 }
  0xf9   :  { %v101_v56 = vmax.f32 %v96_v53, 0.0  ;;  %v261_v57 = vpop.f32.mrb[3].mxu0 }
  0xfb   :  { %v126_v58 = vpack.c.bf16 %v101_v56, %v101_v56 }
  0xfd   :  { %279 = vmatmul.mubr.bf16.vlgmr.msra.gmra.mrb[0].mxu1 %v126_v58 }
  0xfe   :  { %301 = shalt.err (!%p298_p4)
}
  0xff   :  { %s302_s26 = scalar_lea.hbm %s539_s7, 16 }
 0x100   :  { %p303_p5 = scmp.ne.s32.totalorder %s539_s7, %s302_s26  ;;  %p306_p6 = scmp.lt.u32.totalorder %s302_s26, %s539_s7 }
 0x102   :  { %p308_p7 = pnand %p306_p6, %p303_p5 }
 0x104   :  { %311 = shalt.err (!%p308_p7)
}
 0x105   :  { %213 = dma.vmem_to_hbm [thread:$0]  %s211_s3, 16, %s539_s7, [#allocation5]   ;;  %v223_v12 = vld [vmem:[%s536_s4] ss:$0 sm:$0xff] }
 0x106   :  { %s341_s12 = smov [#allocation2]  }
 0x107   :  { %s200_s13 = sshll.u32 %s341_s12, 4  ;;  %s201_s13 = int_to_ptr.vmem [resolvable:$true] %s200_s13 }
 0x108   :  { %s312_s1 = scalar_lea.vmem %s201_s13, 128  ;;  %p317_p9 = scmp.lt.s32.totalorder %s201_s13, %s201_s13 }
 0x109   :  { %p313_p8 = scmp.ne.s32.totalorder %s201_s13, %s312_s1  ;;  %p318_p10 = scmp.lt.s32.totalorder %s312_s1, %s312_s1 }
 0x10b   :  { %p319_p11 = por %p318_p10, %p317_p9 }
 0x10d   :  { %p320_p12 = pnand %p319_p11, %p313_p8 }
 0x1d0   :  { %v168_v13 = vpop.f32.mrb[0].mxu1 }
 0x1d1   :  { %v169_v14 = vadd.f32 %v223_v12, %v168_v13  ;;  %v280_v15 = vpop.f32.mrb[1].mxu1 }
 0x1d2   :  { %v171_v16 = vpop.f32.mrb[2].mxu1 }
 0x1d3   :  { %174 = vst [vmem:[#allocation2] sm:$0xff] %v169_v14  ;;  %v281_v17 = vpop.f32.mrb[3].mxu1 }
 0x1d4   :  { %323 = shalt.err (!%p320_p12)
}
 0x1d5   :  { %s324_s4 = scalar_lea.hbm %s538_s6, 128 }
 0x1d6   :  { %p325_p13 = scmp.ne.s32.totalorder %s538_s6, %s324_s4  ;;  %p328_p0 = scmp.lt.u32.totalorder %s324_s4, %s538_s6 }
 0x1d8   :  { %p330_p1 = pnand %p328_p0, %p325_p13 }
 0x1da   :  { %333 = shalt.err (!%p330_p1)
}
 0x1db   :  { %203 = dma.vmem_to_hbm [thread:$0]  %s201_s13, 128, %s538_s6, [#allocation3]  }
 0x1dc   :  { %334 = dma.done.wait [#allocation3], 128  }
 0x1dd   :  { %335 = vsyncadd [#allocation3], 4294967168 }
 0x1de   :  { %336 = dma.done.wait [#allocation5], 16  }
 0x1df   :  { %337 = vsyncadd [#allocation5], 4294967280 }
 0x1e0   :  { %220 = vsyncpa [#allocation3], 1 }
 0x1e1   :  { %221 = vsyncpa [#allocation5], 1 }

</bundles_post_ra>
